<compile_context>
chip_gen: v5e
topology: v5e:2x2
jax: 0.10.0
libtpu: 0.0.40
codegen_flags: <defaults>
</compile_context>

<pallas_src>
import jax
import jax.numpy as jnp
from jax.experimental import pallas as pl
from jax.experimental.pallas import tpu as pltpu

NUM_REPEATS = 10  # cat([v2, v1, v2, v1, v2], 1) with v1 = v2 = [mm, mm] -> 10 copies of mm


def _cat_mm_kernel(x1_ref, x2_ref, o_ref):
    # Single MXU pass; result goes straight to the output (no f32 scratch round-trip).
    mm = jnp.dot(
        x1_ref[...], x2_ref[...], preferred_element_type=jnp.float32
    ).astype(o_ref.dtype)

    n = mm.shape[1]
    # 10 static, lane-aligned (N is a multiple of 128) slice stores into the
    # single (M, 10*N) output block — unmasked vst, minimum store-slot traffic.
    for i in range(NUM_REPEATS):
        o_ref[:, i * n:(i + 1) * n] = mm


def cat_mm(x1, x2):
    M, K = x1.shape
    K2, N = x2.shape
    assert K == K2, "inner dims must match"
    assert x1.dtype == x2.dtype, "x1 and x2 must share a dtype (torch.mm has no mixed-dtype promotion here)"
    # Guard the unmasked-vst / aligned-layout assumptions (perf review):
    assert N % 128 == 0, "N must be a multiple of 128 for lane-aligned unmasked stores"
    assert M % 8 == 0, "M must be a multiple of 8 for sublane-aligned blocks"

    out_shape = jax.ShapeDtypeStruct((M, NUM_REPEATS * N), x1.dtype)

    itemsize = jnp.dtype(x1.dtype).itemsize
    cost = pl.CostEstimate(
        flops=2 * M * K * N,
        bytes_accessed=(M * K + K * N + M * NUM_REPEATS * N) * itemsize,
        transcendentals=0,
    )

    # Gridless call: whole arrays land in VMEM, body runs once, single output DMA.
    return pl.pallas_call(
        _cat_mm_kernel,
        out_shape=out_shape,
        in_specs=[
            pl.BlockSpec(memory_space=pltpu.MemorySpace.VMEM),
            pl.BlockSpec(memory_space=pltpu.MemorySpace.VMEM),
        ],
        out_specs=pl.BlockSpec(memory_space=pltpu.MemorySpace.VMEM),
        cost_estimate=cost,
    )(x1, x2)


def _reference(x1, x2):
    mm = x1 @ x2
    v1 = jnp.concatenate([mm, mm], axis=1)
    v2 = jnp.concatenate([mm, mm], axis=1)
    return jnp.concatenate([v2, v1, v2, v1, v2], axis=1)


if __name__ == "__main__":
    # Small shapes consistent with torch.mm: x1 (M, K), x2 (K, N).
    M, K, N = 16, 32, 128  # M % 8 == 0, N % 128 == 0 -> fully aligned, unmasked stores
    key = jax.random.PRNGKey(0)
    k1, k2 = jax.random.split(key)
    x1 = jax.random.normal(k1, (M, K), dtype=jnp.float32)
    x2 = jax.random.normal(k2, (K, N), dtype=jnp.float32)

    out = cat_mm(x1, x2)
    out = jax.block_until_ready(out)

    ref = _reference(x1, x2)
    assert out.shape == (M, NUM_REPEATS * N), out.shape
    assert jnp.allclose(out, ref, atol=1e-5, rtol=1e-5), "mismatch vs reference"

    print("KERNEL_OK")
</pallas_src>

<mosaic_0001>
module attributes {stable_mosaic.version = 11 : i64} {
  func.func @_cat_mm_kernel(%arg0: memref<16x32xf32, #tpu.memory_space<vmem>>, %arg1: memref<32x128xf32, #tpu.memory_space<vmem>>, %arg2: memref<16x1280xf32, #tpu.memory_space<vmem>>) attributes {dimension_semantics = [], scalar_prefetch = 0 : i64, scratch_operands = 0 : i64, tpu.core_type = #tpu.core_type<tc>} {
    %c0 = arith.constant 0 : index
    %c0_0 = arith.constant 0 : index
    %0 = vector.load %arg0[%c0, %c0_0] : memref<16x32xf32, #tpu.memory_space<vmem>>, vector<16x32xf32>
    %c0_1 = arith.constant 0 : index
    %c0_2 = arith.constant 0 : index
    %1 = vector.load %arg1[%c0_1, %c0_2] : memref<32x128xf32, #tpu.memory_space<vmem>>, vector<32x128xf32>
    %cst = arith.constant dense<0.000000e+00> : vector<16x128xf32>
    %2 = tpu.matmul %0, %1, %cst {dimension_numbers = #tpu.dot_dimension_numbers<[1], [0], [0], [1], [0, 0, 1, 1], [], []>} : vector<16x32xf32>, vector<32x128xf32>, vector<16x128xf32> -> vector<16x128xf32>
    %c0_3 = arith.constant 0 : index
    %c0_4 = arith.constant 0 : index
    %3 = vector.load %arg2[%c0_3, %c0_4] : memref<16x1280xf32, #tpu.memory_space<vmem>>, vector<16x128xf32>
    tpu.vector_store %arg2[%c0_3, %c0_4], %2 {strides = array<i32>} : memref<16x1280xf32, #tpu.memory_space<vmem>>, vector<16x128xf32>,
    %c0_5 = arith.constant 0 : index
    %c128 = arith.constant 128 : index
    %4 = vector.load %arg2[%c0_5, %c128] : memref<16x1280xf32, #tpu.memory_space<vmem>>, vector<16x128xf32>
    tpu.vector_store %arg2[%c0_5, %c128], %2 {strides = array<i32>} : memref<16x1280xf32, #tpu.memory_space<vmem>>, vector<16x128xf32>,
    %c0_6 = arith.constant 0 : index
    %c256 = arith.constant 256 : index
    %5 = vector.load %arg2[%c0_6, %c256] : memref<16x1280xf32, #tpu.memory_space<vmem>>, vector<16x128xf32>
    tpu.vector_store %arg2[%c0_6, %c256], %2 {strides = array<i32>} : memref<16x1280xf32, #tpu.memory_space<vmem>>, vector<16x128xf32>,
    %c0_7 = arith.constant 0 : index
    %c384 = arith.constant 384 : index
    %6 = vector.load %arg2[%c0_7, %c384] : memref<16x1280xf32, #tpu.memory_space<vmem>>, vector<16x128xf32>
    tpu.vector_store %arg2[%c0_7, %c384], %2 {strides = array<i32>} : memref<16x1280xf32, #tpu.memory_space<vmem>>, vector<16x128xf32>,
    %c0_8 = arith.constant 0 : index
    %c512 = arith.constant 512 : index
    %7 = vector.load %arg2[%c0_8, %c512] : memref<16x1280xf32, #tpu.memory_space<vmem>>, vector<16x128xf32>
    tpu.vector_store %arg2[%c0_8, %c512], %2 {strides = array<i32>} : memref<16x1280xf32, #tpu.memory_space<vmem>>, vector<16x128xf32>,
    %c0_9 = arith.constant 0 : index
    %c640 = arith.constant 640 : index
    %8 = vector.load %arg2[%c0_9, %c640] : memref<16x1280xf32, #tpu.memory_space<vmem>>, vector<16x128xf32>
    tpu.vector_store %arg2[%c0_9, %c640], %2 {strides = array<i32>} : memref<16x1280xf32, #tpu.memory_space<vmem>>, vector<16x128xf32>,
    %c0_10 = arith.constant 0 : index
    %c768 = arith.constant 768 : index
    %9 = vector.load %arg2[%c0_10, %c768] : memref<16x1280xf32, #tpu.memory_space<vmem>>, vector<16x128xf32>
    tpu.vector_store %arg2[%c0_10, %c768], %2 {strides = array<i32>} : memref<16x1280xf32, #tpu.memory_space<vmem>>, vector<16x128xf32>,
    %c0_11 = arith.constant 0 : index
    %c896 = arith.constant 896 : index
    %10 = vector.load %arg2[%c0_11, %c896] : memref<16x1280xf32, #tpu.memory_space<vmem>>, vector<16x128xf32>
    tpu.vector_store %arg2[%c0_11, %c896], %2 {strides = array<i32>} : memref<16x1280xf32, #tpu.memory_space<vmem>>, vector<16x128xf32>,
    %c0_12 = arith.constant 0 : index
    %c1024 = arith.constant 1024 : index
    %11 = vector.load %arg2[%c0_12, %c1024] : memref<16x1280xf32, #tpu.memory_space<vmem>>, vector<16x128xf32>
    tpu.vector_store %arg2[%c0_12, %c1024], %2 {strides = array<i32>} : memref<16x1280xf32, #tpu.memory_space<vmem>>, vector<16x128xf32>,
    %c0_13 = arith.constant 0 : index
    %c1152 = arith.constant 1152 : index
    %12 = vector.load %arg2[%c0_13, %c1152] : memref<16x1280xf32, #tpu.memory_space<vmem>>, vector<16x128xf32>
    tpu.vector_store %arg2[%c0_13, %c1152], %2 {strides = array<i32>} : memref<16x1280xf32, #tpu.memory_space<vmem>>, vector<16x128xf32>,
    return
  }
}

</mosaic_0001>

<bundles_post_ra>
// kernel: tpu_custom_call.1
= control target key start
LH: loop header
LB: loop body
LE: loop exit
PB: predicated region body
PF: predicated region fallthrough
CT: control target
= control target key end

     0   :  { %7 = vsyncpa [#allocation3], 0  ;;  %s242_s0 = inlined_call_operand.hbm [shape: f32[16,32], index: 0, kind: input, shape index: {}]   ;;  %s243_s1 = inlined_call_operand.hbm [shape: f32[32,128], index: 1, kind: input, shape index: {}]   ;;  %s244_s2 = inlined_call_operand.hbm [shape: f32[16,1280], index: 2, kind: output, shape index: {}]  }
   0x1   :  { %8 = vsyncpa [#allocation6], 0 }
   0x2   :  { %9 = vsyncpa [#allocation4], 0  ;;  %s14_s11 = sshll.u32 %s242_s0, 4  ;;  %s211_s12 = smov [#allocation2]   ;;  %s15_s11 = int_to_ptr.hbm [resolvable:$true] %s14_s11 }
   0x3   :  { %s16_s13 = sshll.u32 %s211_s12, 4  ;;  %s27_s16 = sshll.u32 %s243_s1, 4  ;;  %s17_s13 = int_to_ptr.vmem [resolvable:$true] %s16_s13  ;;  %s28_s16 = int_to_ptr.hbm [resolvable:$true] %s27_s16 }
   0x4   :  { %s212_s17 = smov 128   ;;  %s213_s18 = smov 8  }
   0x5   :  { %22 = dma.hbm_to_vmem [thread:$0]  %s15_s11, 256, %s17_s13, [#allocation3], %s212_s17, %s212_s17, %s213_s18  }
   0x6   :  { %s214_s19 = smov [#allocation5]  }
   0x7   :  { %s29_s20 = sshll.u32 %s214_s19, 4  ;;  %s30_s20 = int_to_ptr.vmem [resolvable:$true] %s29_s20 }
   0x8   :  { %35 = dma.hbm_to_vmem [thread:$0]  %s28_s16, 512, %s30_s20, [#allocation6], %s212_s17, %s212_s17, %s213_s18  }
   0x9   :  { %205 = dma.done.wait [#allocation3], 256  }
   0xa   :  { %206 = vsyncadd [#allocation3], 4294967040 }
   0xb   :  { %207 = dma.done.wait [#allocation6], 512  }
   0xc   :  { %208 = vsyncadd [#allocation6], 4294966784  ;;  %v49_v0 = vld [vmem:[#allocation5 + $0x18] sm:$0xff]  ;;  %v48_v1 = vld [vmem:[#allocation5 + $0x10] sm:$0xff]  ;;  %vm50_vm0 = vcmask 261120   ;;  %s215_s0 = smov [#allocation7]  }
   0xd   :  { %69 = vmatpush.msra.mxu0 %v49_v0  ;;  %122 = vmatpush.msra.mxu1 %v49_v0  ;;  %v47_v2 = vld [vmem:[#allocation5 + $0x8] sm:$0xff]  ;;  %v46_v3 = vld [vmem:[#allocation5] sm:$0xff]  ;;  %v44_v4 = vld [vmem:[#allocation2] sm:$0xff]  ;;  %s104_s1 = sshll.u32 %s215_s0, 4  ;;  %s106_s23 = sshll.u32 %s244_s2, 4  ;;  %s105_s1 = int_to_ptr.vmem [resolvable:$true] %s104_s1  ;;  %s107_s23 = int_to_ptr.hbm [resolvable:$true] %s106_s23 }
   0xe   :  { %v45_v5 = vld [vmem:[#allocation2 + $0x8] sm:$0xff]  ;;  %s216_s24 = smov 1280   ;;  %s217_s25 = smov 80  }
   0xf   :  { %70 = vmatpush.msra.mxu0 %v48_v1  ;;  %123 = vmatpush.msra.mxu1 %v48_v1 }
  0x11   :  { %71 = vmatpush.msra.mxu0 %v47_v2  ;;  %124 = vmatpush.msra.mxu1 %v47_v2 }
  0x13   :  { %72 = vmatpush.msra.mxu0 %v46_v3  ;;  %125 = vmatpush.msra.mxu1 %v46_v3 }
  0x14   :  { %120 = vmatmul.msk.f32.vlgmr.msra.gmra.mxu0 %vm50_vm0, %v44_v4  ;;  %121 = vmatmul.msk.f32.vlgmr.msra.gmra.mxu1 %vm50_vm0, %v45_v5 }
  0x91   :  { %v74_v6 = vpop.f32.mrf.mxu0  ;;  %v77_v7 = vpop.f32.mrf.mxu1 }
  0x92   :  { %80 = vst [vmem:[#allocation7] sm:$0xff] %v74_v6 }
  0x93   :  { %82 = vst [vmem:[#allocation7 + $0x8] sm:$0xff] %v74_v6 }
  0x94   :  { %84 = vst [vmem:[#allocation7 + $0x10] sm:$0xff] %v74_v6 }
  0x95   :  { %86 = vst [vmem:[#allocation7 + $0x18] sm:$0xff] %v74_v6 }
  0x96   :  { %88 = vst [vmem:[#allocation7 + $0x20] sm:$0xff] %v74_v6 }
  0x97   :  { %90 = vst [vmem:[#allocation7 + $0x28] sm:$0xff] %v74_v6 }
  0x98   :  { %92 = vst [vmem:[#allocation7 + $0x30] sm:$0xff] %v74_v6 }
  0x99   :  { %94 = vst [vmem:[#allocation7 + $0x38] sm:$0xff] %v74_v6 }
  0x9a   :  { %96 = vst [vmem:[#allocation7 + $0x40] sm:$0xff] %v74_v6 }
  0x9b   :  { %98 = vst [vmem:[#allocation7 + $0x48] sm:$0xff] %v74_v6 }
  0x9c   :  { %81 = vst [vmem:[#allocation7 + $0x50] sm:$0xff] %v77_v7 }
  0x9d   :  { %83 = vst [vmem:[#allocation7 + $0x58] sm:$0xff] %v77_v7 }
  0x9e   :  { %85 = vst [vmem:[#allocation7 + $0x60] sm:$0xff] %v77_v7 }
  0x9f   :  { %87 = vst [vmem:[#allocation7 + $0x68] sm:$0xff] %v77_v7 }
  0xa0   :  { %89 = vst [vmem:[#allocation7 + $0x70] sm:$0xff] %v77_v7 }
  0xa1   :  { %91 = vst [vmem:[#allocation7 + $0x78] sm:$0xff] %v77_v7 }
  0xa2   :  { %93 = vst [vmem:[#allocation7 + $0x80] sm:$0xff] %v77_v7 }
  0xa3   :  { %95 = vst [vmem:[#allocation7 + $0x88] sm:$0xff] %v77_v7 }
  0xa4   :  { %97 = vst [vmem:[#allocation7 + $0x90] sm:$0xff] %v77_v7 }
  0xa5   :  { %99 = vst [vmem:[#allocation7 + $0x98] sm:$0xff] %v77_v7 }
  0xa6   :  { %112 = dma.vmem_to_hbm [thread:$0]  %s105_s1, 2560, %s107_s23, [#allocation4], %s216_s24, %s216_s24, %s217_s25  }
  0xa7   :  { %209 = dma.done.wait [#allocation4], 2560  }
  0xa8   :  { %210 = vsyncadd [#allocation4], 4294964736 }
  0xa9   :  { %117 = vsyncpa [#allocation3], 1 }
  0xaa   :  { %118 = vsyncpa [#allocation6], 1 }
  0xab   :  { %119 = vsyncpa [#allocation4], 1 }

</bundles_post_ra>
